<compile_context>
chip_gen: v5e
topology: v5e:2x2
jax: 0.10.0
libtpu: 0.0.40
codegen_flags: <defaults>
</compile_context>

<pallas_src>
import jax
import jax.numpy as jnp
from jax import lax
from jax.experimental import pallas as pl
from jax.experimental.pallas import tpu as pltpu

EPS = 1e-5  # nn.LayerNorm default


def _round_up(n, m):
    return ((n + m - 1) // m) * m


def prenorm_linear_kernel(x_ref, g_ref, b_ref, w_ref, bias_ref, o_ref):
    # x_ref: (TM, D); g/b: (1, D); w: (D, TN) bf16; bias: (1, TN); o: (TM, TN)
    x = x_ref[...].astype(jnp.float32)
    inv_d = jnp.float32(1.0 / x.shape[-1])

    # One-pass LayerNorm statistics (biased variance, PyTorch semantics).
    s1 = jnp.sum(x, axis=-1, keepdims=True)
    s2 = jnp.sum(x * x, axis=-1, keepdims=True)
    mean = s1 * inv_d
    var = jnp.maximum(s2 * inv_d - mean * mean, 0.0)
    xn = (x - mean) * lax.rsqrt(var + EPS)          # rsqrt -> EUP slot
    y = xn * g_ref[...].astype(jnp.float32) + b_ref[...].astype(jnp.float32)

    # fn = Linear: bf16 MXU matmul, f32 accumulation.
    out = jnp.dot(y.astype(jnp.bfloat16), w_ref[...],
                  preferred_element_type=jnp.float32)
    out = out + bias_ref[...].astype(jnp.float32)
    o_ref[...] = out.astype(o_ref.dtype)


def prenorm_linear(x, gamma, beta, w, bias):
    """x: (B, S, D); returns (B, S, Dout) = Linear(LayerNorm(x))."""
    B, S, D = x.shape
    Dout = w.shape[1]
    R = B * S

    # Column tile: lane-dense multiple of 128, capped at 512.
    TN = min(512, _round_up(Dout, 128))
    Dout_pad = _round_up(Dout, TN)

    # Row tile: start at 256 rows (8-sublane aligned) and shrink if the
    # double-buffered working set would blow the VMEM budget for large D.
    TM = min(256, _round_up(R, 8))
    VMEM_BUDGET = 40 * 1024 * 1024
    while TM > 8 and 2 * (TM * D * 4 + D * TN * 2 + TM * TN * 4) > VMEM_BUDGET:
        TM //= 2
    TM = max(TM, 8)
    R_pad = _round_up(R, TM)

    # Pad rows / Dout to exact tile multiples (padded rows give finite LN
    # outputs; padded weight cols give zeros; all sliced off at the end).
    x2 = x.reshape(R, D)
    if R_pad != R:
        x2 = jnp.pad(x2, ((0, R_pad - R), (0, 0)))
    w_p, bias_p = w, bias
    if Dout_pad != Dout:
        w_p = jnp.pad(w_p, ((0, 0), (0, Dout_pad - Dout)))
        bias_p = jnp.pad(bias_p, ((0, Dout_pad - Dout),))

    g2 = gamma.reshape(1, D)
    b2 = beta.reshape(1, D)
    w2 = w_p.astype(jnp.bfloat16)            # bf16-resident weights (halved traffic)
    bias2 = bias_p.reshape(1, Dout_pad)

    grid = (R_pad // TM, Dout_pad // TN)

    out = pl.pallas_call(
        prenorm_linear_kernel,
        out_shape=jax.ShapeDtypeStruct((R_pad, Dout_pad), x.dtype),
        grid_spec=pltpu.PrefetchScalarGridSpec(
            num_scalar_prefetch=0,
            grid=grid,
            in_specs=[
                pl.BlockSpec((TM, D), lambda i, j: (i, 0)),       # x rows stream
                pl.BlockSpec((1, D), lambda i, j: (0, 0)),        # gamma (resident)
                pl.BlockSpec((1, D), lambda i, j: (0, 0)),        # beta  (resident)
                pl.BlockSpec((D, TN), lambda i, j: (0, j)),       # weight col-tile
                pl.BlockSpec((1, TN), lambda i, j: (0, j)),       # bias col-tile
            ],
            out_specs=pl.BlockSpec((TM, TN), lambda i, j: (i, j)),
        ),
        compiler_params=pltpu.CompilerParams(
            dimension_semantics=("parallel", "parallel"),
            vmem_limit_bytes=48 * 1024 * 1024,   # headroom under v7x 64 MiB
        ),
    )(x2, g2, b2, w2, bias2)

    return out[:R, :Dout].reshape(B, S, Dout)


def prenorm_linear_ref(x, gamma, beta, w, bias):
    xf = x.astype(jnp.float32)
    mean = jnp.mean(xf, axis=-1, keepdims=True)
    var = jnp.mean((xf - mean) ** 2, axis=-1, keepdims=True)
    xn = (xf - mean) / jnp.sqrt(var + EPS)
    y = xn * gamma + beta
    return (y @ w.astype(jnp.float32) + bias).astype(x.dtype)


if __name__ == "__main__":
    # Small, lane-dense shapes consistent with the module: dim = 128.
    B, S, D = 2, 8, 128
    Dout = 128

    key = jax.random.PRNGKey(0)
    kx, kg, kb, kw, kbias = jax.random.split(key, 5)

    x = jax.random.normal(kx, (B, S, D), dtype=jnp.float32)
    # Deterministic synthetic parameters (not a checkpoint load).
    gamma = 1.0 + 0.1 * jax.random.normal(kg, (D,), dtype=jnp.float32)
    beta = 0.1 * jax.random.normal(kb, (D,), dtype=jnp.float32)
    w = jax.random.normal(kw, (D, Dout), dtype=jnp.float32) / jnp.sqrt(D)
    bias = 0.1 * jax.random.normal(kbias, (Dout,), dtype=jnp.float32)

    # TODO(synk): PreNorm wraps an arbitrary `fn`; a generic callable cannot be
    # fused generically, so it is instantiated here as nn.Linear(dim, dim).
    out = prenorm_linear(x, gamma, beta, w, bias)
    out = jax.block_until_ready(out)

    ref = prenorm_linear_ref(x, gamma, beta, w, bias)
    assert out.shape == (B, S, Dout)
    # bf16 matmul inputs -> looser tolerance than a pure-f32 dot.
    assert jnp.allclose(out, ref, atol=3e-2, rtol=3e-2), (
        float(jnp.max(jnp.abs(out - ref))))

    print("KERNEL_OK")
</pallas_src>

<mosaic_0001>
module attributes {stable_mosaic.version = 11 : i64} {
  func.func @prenorm_linear_kernel(%arg0: i32, %arg1: i32, %arg2: memref<16x128xf32, #tpu.memory_space<vmem>>, %arg3: memref<1x128xf32, #tpu.memory_space<vmem>>, %arg4: memref<1x128xf32, #tpu.memory_space<vmem>>, %arg5: memref<128x128xbf16, #tpu.memory_space<vmem>>, %arg6: memref<1x128xf32, #tpu.memory_space<vmem>>, %arg7: memref<16x128xf32, #tpu.memory_space<vmem>>) attributes {dimension_semantics = [#tpu.dimension_semantics<parallel>, #tpu.dimension_semantics<parallel>], iteration_bounds = array<i64: 1, 1>, scalar_prefetch = 0 : i64, scratch_operands = 0 : i64, tpu.core_type = #tpu.core_type<tc>, window_params = [{transform_indices = @transform_0, window_bounds = array<i64: 16, 128>}, {pipeline_mode = #tpu.pipeline_mode<synchronous>, transform_indices = @transform_1, window_bounds = array<i64: 1, 128>}, {pipeline_mode = #tpu.pipeline_mode<synchronous>, transform_indices = @transform_2, window_bounds = array<i64: 1, 128>}, {transform_indices = @transform_3, window_bounds = array<i64: 128, 128>}, {transform_indices = @transform_4, window_bounds = array<i64: 1, 128>}, {transform_indices = @transform_5, window_bounds = array<i64: 16, 128>}]} {
    %c0 = arith.constant 0 : index
    %c0_0 = arith.constant 0 : index
    %0 = vector.load %arg2[%c0, %c0_0] : memref<16x128xf32, #tpu.memory_space<vmem>>, vector<16x128xf32>
    %cst = arith.constant dense<0.000000e+00> : vector<16xf32>
    %1 = vector.multi_reduction <add>, %0, %cst [1] : vector<16x128xf32> to vector<16xf32>
    %2 = vector.shape_cast %1 : vector<16xf32> to vector<16x1xf32>
    %3 = arith.mulf %0, %0 : vector<16x128xf32>
    %cst_1 = arith.constant dense<0.000000e+00> : vector<16xf32>
    %4 = vector.multi_reduction <add>, %3, %cst_1 [1] : vector<16x128xf32> to vector<16xf32>
    %5 = vector.shape_cast %4 : vector<16xf32> to vector<16x1xf32>
    %cst_2 = arith.constant 7.812500e-03 : f32
    %6 = vector.broadcast %cst_2 : f32 to vector<16x1xf32>
    %7 = arith.mulf %2, %6 : vector<16x1xf32>
    %cst_3 = arith.constant 7.812500e-03 : f32
    %8 = vector.broadcast %cst_3 : f32 to vector<16x1xf32>
    %9 = arith.mulf %5, %8 : vector<16x1xf32>
    %10 = arith.mulf %7, %7 : vector<16x1xf32>
    %11 = arith.subf %9, %10 : vector<16x1xf32>
    %cst_4 = arith.constant 0.000000e+00 : f32
    %12 = vector.broadcast %cst_4 : f32 to vector<16x1xf32>
    %13 = arith.maximumf %11, %12 : vector<16x1xf32>
    %14 = vector.broadcast %7 : vector<16x1xf32> to vector<16x128xf32>
    %15 = arith.subf %0, %14 : vector<16x128xf32>
    %cst_5 = arith.constant 9.99999974E-6 : f32
    %16 = vector.broadcast %cst_5 : f32 to vector<16x1xf32>
    %17 = arith.addf %13, %16 : vector<16x1xf32>
    %18 = math.rsqrt %17 : vector<16x1xf32>
    %19 = vector.broadcast %18 : vector<16x1xf32> to vector<16x128xf32>
    %20 = arith.mulf %15, %19 : vector<16x128xf32>
    %c0_6 = arith.constant 0 : index
    %c0_7 = arith.constant 0 : index
    %21 = vector.load %arg3[%c0_6, %c0_7] : memref<1x128xf32, #tpu.memory_space<vmem>>, vector<1x128xf32>
    %22 = vector.broadcast %21 : vector<1x128xf32> to vector<16x128xf32>
    %23 = arith.mulf %20, %22 : vector<16x128xf32>
    %c0_8 = arith.constant 0 : index
    %c0_9 = arith.constant 0 : index
    %24 = vector.load %arg4[%c0_8, %c0_9] : memref<1x128xf32, #tpu.memory_space<vmem>>, vector<1x128xf32>
    %25 = vector.broadcast %24 : vector<1x128xf32> to vector<16x128xf32>
    %26 = arith.addf %23, %25 : vector<16x128xf32>
    %27 = arith.truncf %26 : vector<16x128xf32> to vector<16x128xbf16>
    %c0_10 = arith.constant 0 : index
    %c0_11 = arith.constant 0 : index
    %28 = vector.load %arg5[%c0_10, %c0_11] : memref<128x128xbf16, #tpu.memory_space<vmem>>, vector<128x128xbf16>
    %cst_12 = arith.constant dense<0.000000e+00> : vector<16x128xf32>
    %29 = tpu.matmul %27, %28, %cst_12 {dimension_numbers = #tpu.dot_dimension_numbers<[1], [0], [0], [1], [0, 0, 1, 1], [], []>} : vector<16x128xbf16>, vector<128x128xbf16>, vector<16x128xf32> -> vector<16x128xf32>
    %c0_13 = arith.constant 0 : index
    %c0_14 = arith.constant 0 : index
    %30 = vector.load %arg6[%c0_13, %c0_14] : memref<1x128xf32, #tpu.memory_space<vmem>>, vector<1x128xf32>
    %31 = vector.broadcast %30 : vector<1x128xf32> to vector<16x128xf32>
    %32 = arith.addf %29, %31 : vector<16x128xf32>
    %c0_15 = arith.constant 0 : index
    %c0_16 = arith.constant 0 : index
    %33 = vector.load %arg7[%c0_15, %c0_16] : memref<16x128xf32, #tpu.memory_space<vmem>>, vector<16x128xf32>
    tpu.vector_store %arg7[%c0_15, %c0_16], %32 {strides = array<i32>} : memref<16x128xf32, #tpu.memory_space<vmem>>, vector<16x128xf32>,
    return
  }
  func.func @transform_0(%arg0: i32, %arg1: i32) -> (i32, i32) {
    %c0_i32 = arith.constant 0 : i32
    %c0_i32_0 = arith.constant 0 : i32
    return %arg0, %c0_i32 : i32, i32
  }
  func.func @transform_1(%arg0: i32, %arg1: i32) -> (i32, i32) {
    %c0_i32 = arith.constant 0 : i32
    %c0_i32_0 = arith.constant 0 : i32
    %c0_i32_1 = arith.constant 0 : i32
    return %c0_i32, %c0_i32_0 : i32, i32
  }
  func.func @transform_2(%arg0: i32, %arg1: i32) -> (i32, i32) {
    %c0_i32 = arith.constant 0 : i32
    %c0_i32_0 = arith.constant 0 : i32
    %c0_i32_1 = arith.constant 0 : i32
    return %c0_i32, %c0_i32_0 : i32, i32
  }
  func.func @transform_3(%arg0: i32, %arg1: i32) -> (i32, i32) {
    %c0_i32 = arith.constant 0 : i32
    %c0_i32_0 = arith.constant 0 : i32
    return %c0_i32, %arg1 : i32, i32
  }
  func.func @transform_4(%arg0: i32, %arg1: i32) -> (i32, i32) {
    %c0_i32 = arith.constant 0 : i32
    %c0_i32_0 = arith.constant 0 : i32
    return %c0_i32, %arg1 : i32, i32
  }
  func.func @transform_5(%arg0: i32, %arg1: i32) -> (i32, i32) {
    %c0_i32 = arith.constant 0 : i32
    return %arg0, %arg1 : i32, i32
  }
}

</mosaic_0001>

<bundles_post_ra>
// kernel: tpu_custom_call.1
= control target key start
LH: loop header
LB: loop body
LE: loop exit
PB: predicated region body
PF: predicated region fallthrough
CT: control target
= control target key end

     0   :  { %10 = vsyncpa [#allocation3], 0  ;;  %s456_s0 = inlined_call_operand.hbm [shape: f32[16,128], index: 0, kind: input, shape index: {}]   ;;  %s457_s1 = inlined_call_operand.hbm [shape: f32[1,128], index: 1, kind: input, shape index: {}]   ;;  %s458_s2 = inlined_call_operand.vmem [shape: f32[1,128], index: 2, kind: input, shape index: {}]   ;;  %s459_s3 = inlined_call_operand.hbm [shape: bf16[128,128], index: 3, kind: input, shape index: {}]   ;;  %s460_s4 = inlined_call_operand.vmem [shape: f32[1,128], index: 4, kind: input, shape index: {}]   ;;  %s461_s5 = inlined_call_operand.hbm [shape: f32[16,128], index: 5, kind: output, shape index: {}]  }
   0x1   :  { %11 = vsyncpa [#allocation6], 0  ;;  %s31_s20 = sshll.u32 %s457_s1, 4  ;;  %s32_s20 = int_to_ptr.hbm [resolvable:$true] %s31_s20 }
   0x2   :  { %12 = vsyncpa [#allocation4], 0  ;;  %s388_s21 = smov [#allocation5]   ;;  %s17_s25 = sshll.u32 %s456_s0, 4  ;;  %s18_s25 = int_to_ptr.hbm [resolvable:$true] %s17_s25 }
   0x3   :  { %s33_s22 = sshll.u32 %s388_s21, 4  ;;  %s389_s26 = smov [#allocation2]   ;;  %s34_s22 = int_to_ptr.vmem [resolvable:$true] %s33_s22 }
   0x4   :  { %36 = dma.hbm_to_vmem [thread:$0]  %s32_s20, 16, %s34_s22, [#allocation6]  }
   0x5   :  { %s19_s27 = sshll.u32 %s389_s26, 4  ;;  %s390_s28 = smov 128   ;;  %s20_s27 = int_to_ptr.vmem [resolvable:$true] %s19_s27 }
   0x6   :  { %s391_s29 = smov 8   ;;  %s43_s6 = sshll.u32 %s459_s3, 4  ;;  %s44_s6 = int_to_ptr.hbm [resolvable:$true] %s43_s6 }
   0x7   :  { %25 = dma.hbm_to_vmem [thread:$0]  %s18_s25, 256, %s20_s27, [#allocation3], %s390_s28, %s390_s28, %s391_s29  }
   0x8   :  { %s392_s7 = smov [#allocation7]   ;;  %s393_s0 = smov 64  }
   0x9   :  { %s45_s8 = sshll.u32 %s392_s7, 4  ;;  %s394_s9 = smov 4   ;;  %s46_s8 = int_to_ptr.vmem [resolvable:$true] %s45_s8 }
   0xa   :  { %51 = dma.hbm_to_vmem [thread:$0]  %s44_s6, 1024, %s46_s8, [#allocation6], %s393_s0, %s393_s0, %s394_s9  }
   0xb   :  { %382 = dma.done.wait [#allocation3], 256  }
   0xc   :  { %383 = vsyncadd [#allocation3], 4294967040 }
   0xd   :  { %384 = dma.done.wait [#allocation6], 1040  }
   0xe   :  { %385 = vsyncadd [#allocation6], 4294966256  ;;  %v66_v0 = vld [vmem:[#allocation2] sm:$0xff]  ;;  %v438_v2 = vld [vmem:[#allocation2 + $0x8] sm:$0xff]  ;;  %s395_s13 = smov [#allocation8]   ;;  %s217_s17 = sshll.u32 %s461_s5, 4  ;;  %s218_s17 = int_to_ptr.hbm [resolvable:$true] %s217_s17 }
   0xf   :  { %68 = vadd.xlane.f32.xlu0 %v66_v0  ;;  %v72_v1 = vmul.f32 %v66_v0, %v66_v0  ;;  %v73_v3 = vmul.f32 %v438_v2, %v438_v2  ;;  %v270_v4 = vld [vmem:[#allocation7 + $0x38] sm:$0xff]  ;;  %v269_v5 = vld [vmem:[#allocation7 + $0x30] sm:$0xff]  ;;  %v268_v6 = vld [vmem:[#allocation7 + $0x28] sm:$0xff]  ;;  %s215_s14 = sshll.u32 %s395_s13, 4  ;;  %s216_s14 = int_to_ptr.vmem [resolvable:$true] %s215_s14 }
  0x10   :  { %195 = vmatpush.bf16.msra.mxu0 %v270_v4  ;;  %v267_v7 = vld [vmem:[#allocation7 + $0x20] sm:$0xff]  ;;  %v266_v8 = vld [vmem:[#allocation7 + $0x18] sm:$0xff]  ;;  %v265_v11 = vld [vmem:[#allocation7 + $0x10] sm:$0xff] }
  0x11   :  { %74 = vadd.xlane.f32.xlu1 %v72_v1  ;;  %v264_v15 = vld [vmem:[#allocation7 + $0x8] sm:$0xff]  ;;  %v263_v18 = vld [vmem:[#allocation7] sm:$0xff]  ;;  %v279_v42 = vld [vmem:[#allocation5] ss:$0 sm:$0xff] }
  0x12   :  { %v280_v48 = vld [vmem:[%s458_s2] ss:$0 sm:$0xff] }
  0x13   :  { %v281_v53 = vld [vmem:[%s460_s4] ss:$0 sm:$0xff] }
  0x14   :  { %196 = vmatpush.bf16.msra.mxu0 %v269_v5 }
  0x17   :  { %70 = vadd.xlane.f32.xlu0 %v438_v2 }
  0x18   :  { %197 = vmatpush.bf16.msra.mxu0 %v268_v6 }
  0x19   :  { %76 = vadd.xlane.f32.xlu1 %v73_v3 }
  0x1c   :  { %198 = vmatpush.bf16.msra.mxu0 %v267_v7 }
  0x20   :  { %199 = vmatpush.bf16.msra.mxu0 %v266_v8 }
  0x24   :  { %200 = vmatpush.bf16.msra.mxu0 %v265_v11 }
  0x28   :  { %201 = vmatpush.bf16.msra.mxu0 %v264_v15 }
  0x2c   :  { %202 = vmatpush.bf16.msra.mxu0 %v263_v18 }
  0x82   :  { %v69_v9 = vpop.xlane.xlu0 %68 }
  0x83   :  { %v78_v10 = vmul.f32 0.0078125, %v69_v9 }
  0x84   :  { %v75_v12 = vpop.xlane.xlu1 %74 }
  0x85   :  { %v82_v13 = vmul.f32 %v78_v10, %v78_v10  ;;  %v80_v14 = vmul.f32 0.0078125, %v75_v12  ;;  %v88_v39 = vsub.f32 %v66_v0, %v78_v10 }
  0x87   :  { %v84_v16 = vsub.f32 %v80_v14, %v82_v13 }
  0x89   :  { %v86_v17 = vmax.f32 %v84_v16, 0.0 }
  0x8a   :  { %v71_v19 = vpop.xlane.xlu0 %70 }
  0x8b   :  { %v90_v20 = vadd.f32 1e-05, %v86_v17  ;;  %v79_v21 = vmul.f32 0.0078125, %v71_v19 }
  0x8c   :  { %v77_v22 = vpop.xlane.xlu1 %76 }
  0x8d   :  { %282 = vrsqrt.f32 %v90_v20  ;;  %v83_v23 = vmul.f32 %v79_v21, %v79_v21  ;;  %v81_v24 = vmul.f32 0.0078125, %v77_v22  ;;  %vm98_vm1 = vweird.f32 %v90_v20 }
  0x8e   :  { %v89_v44 = vsub.f32 %v438_v2, %v79_v21 }
  0x8f   :  { %v85_v25 = vsub.f32 %v81_v24, %v83_v23 }
  0x91   :  { %v87_v26 = vmax.f32 %v85_v25, 0.0 }
  0x93   :  { %v283_v27 = vpop.eup %282  ;;  %v91_v29 = vadd.f32 1e-05, %v87_v26 }
  0x94   :  { %v93_v28 = vmul.f32 %v283_v27, %v90_v20  ;;  %vm99_vm0 = vweird.f32 %v283_v27 }
  0x95   :  { %284 = vrsqrt.f32 %v91_v29  ;;  %vm100_vm2 = vmor %vm98_vm1, %vm99_vm0  ;;  %vm108_vm4 = vweird.f32 %v91_v29 }
  0x96   :  { %v94_v30 = vmul.f32 %v283_v27, %v93_v28 }
  0x98   :  { %v95_v31 = vmul.f32 0.5, %v94_v30 }
  0x9a   :  { %v96_v32 = vsub.f32 1.5, %v95_v31 }
  0x9b   :  { %v285_v33 = vpop.eup %284 }
  0x9c   :  { %v103_v34 = vmul.f32 %v285_v33, %v91_v29  ;;  %v97_v35 = vmul.f32 %v283_v27, %v96_v32  ;;  %vm109_vm3 = vweird.f32 %v285_v33 }
  0x9d   :  { %vm110_vm5 = vmor %vm108_vm4, %vm109_vm3 }
  0x9e   :  { %v104_v36 = vmul.f32 %v285_v33, %v103_v34  ;;  %v101_v38 = vsel %vm100_vm2, %v283_v27, %v97_v35 }
  0x9f   :  { %v112_v41 = vmul.f32 %v101_v38, %v88_v39 }
  0xa0   :  { %v105_v37 = vmul.f32 0.5, %v104_v36 }
  0xa1   :  { %v118_v47 = vmul.f32 %v279_v42, %v112_v41 }
  0xa2   :  { %v106_v40 = vsub.f32 1.5, %v105_v37 }
  0xa3   :  { %v124_v50 = vadd.f32 %v280_v48, %v118_v47 }
  0xa4   :  { %v107_v43 = vmul.f32 %v285_v33, %v106_v40 }
  0xa6   :  { %v111_v45 = vsel %vm110_vm5, %v285_v33, %v107_v43 }
  0xa7   :  { %v113_v46 = vmul.f32 %v111_v45, %v89_v44 }
  0xa9   :  { %v119_v49 = vmul.f32 %v279_v42, %v113_v46 }
  0xab   :  { %v125_v51 = vadd.f32 %v280_v48, %v119_v49 }
  0xad   :  { %v126_v52 = vpack.c.bf16 %v125_v51, %v124_v50 }
  0xaf   :  { %203 = vmatmul.bf16.vlgmr.msra.gmra.mxu0 %v126_v52 }
 0x12c   :  { %v204_v54 = vpop.f32.mrf.mxu0 }
 0x12d   :  { %v205_v55 = vadd.f32 %v281_v53, %v204_v54 }
 0x12f   :  { %209 = vst [vmem:[#allocation8] sm:$0xff] %v205_v55 }
 0x134   :  { %v206_v56 = vpop.f32.mrf.mxu0 }
 0x135   :  { %v207_v57 = vadd.f32 %v281_v53, %v206_v56 }
 0x137   :  { %210 = vst [vmem:[#allocation8 + $0x8] sm:$0xff] %v207_v57 }
 0x138   :  { %223 = dma.vmem_to_hbm [thread:$0]  %s216_s14, 256, %s218_s17, [#allocation4], %s390_s28, %s390_s28, %s391_s29  }
 0x139   :  { %386 = dma.done.wait [#allocation4], 256  }
 0x13a   :  { %387 = vsyncadd [#allocation4], 4294967040 }
 0x13b   :  { %228 = vsyncpa [#allocation3], 1 }
 0x13c   :  { %229 = vsyncpa [#allocation6], 1 }
 0x13d   :  { %230 = vsyncpa [#allocation4], 1 }

</bundles_post_ra>
